<compile_context>
chip_gen: v7x
topology: tpu7x:2x2x1
jax: 0.10.0
libtpu: 0.0.40
codegen_flags: <defaults>
</compile_context>

<pallas_src>
import jax
import jax.numpy as jnp
from jax.experimental import pallas as pl
from jax.experimental.pallas import tpu as pltpu


def _proj_disc_kernel(x_ref, emb_ref, out_ref):
    # x_ref:   (TB, C, THW)  feature-map tile, native dtype (f32/bf16)
    # emb_ref: (2, TB, C)    stacked [font, char] embedding rows, f32
    # out_ref: (2, TB, THW)  stacked [font, char] projections
    C = x_ref.shape[1]
    use_mxu = (C > 32) or (x_ref.dtype != jnp.float32)

    if use_mxu:
        # Single fused MXU contraction for both heads: one pass of the x tile
        # through the systolic array; bf16 x bf16 (or f32 x f32) -> f32 acc.
        x = x_ref[...]
        emb = emb_ref[...].astype(x.dtype)
        out = jnp.einsum('kbc,bcs->kbs', emb, x,
                         preferred_element_type=jnp.float32)
        out_ref[...] = out.astype(out_ref.dtype)
    else:
        # VPU path for small-C f32: unrolled broadcast-multiply-accumulate over
        # channels. Channel slices are read straight from the ref, so no
        # tile-sized f32 temp is ever materialized.
        emb = emb_ref[...]
        acc = emb[:, :, 0:1] * x_ref[:, 0, :].astype(jnp.float32)[None]
        for c in range(1, C):
            acc = acc + emb[:, :, c:c + 1] * x_ref[:, c, :].astype(jnp.float32)[None]
        out_ref[...] = acc.astype(out_ref.dtype)


def _round_up(v, m):
    return -(-v // m) * m


def _vmem_capacity_bytes():
    """Per-core physical VMEM (v5e/v6e: 128 MiB, v7x: 64 MiB)."""
    try:
        cap = getattr(pltpu.get_tpu_info(), "vmem_capacity_bytes", None)
        if cap:
            return int(cap)
    except Exception:
        pass
    return 64 * 1024 * 1024  # conservative fallback (v7x per-TC size)


def projection_discriminator_forward(x, font_emb_w, char_emb_w,
                                     font_indice, char_indice):
    """x: (B, C, H, W); *_emb_w: spectrally-normalized embedding tables."""
    B, C, H, W = x.shape
    HW = H * W

    # activ='none' -> identity.
    # Tiny embedding gathers done in plain-JAX glue, stacked so the kernel sees
    # a single small (2, B, C) side input.
    # NOTE: jnp.take clips out-of-range indices (torch Embedding would raise).
    font_emb = jnp.take(font_emb_w, font_indice, axis=0)               # (B, C)
    char_emb = jnp.take(char_emb_w, char_indice, axis=0)               # (B, C)
    emb = jnp.stack([font_emb, char_emb], axis=0).astype(jnp.float32)  # (2, B, C)

    # Keep x in its input dtype (no HBM upcast); flatten spatial dims.
    x_flat = x.reshape(B, C, HW)
    itemsize = jnp.dtype(x.dtype).itemsize

    # ---- tile-size selection -------------------------------------------------
    # Batch tile: 8 (sublane-dense output stores) with a partial last block for
    # any B >= 8, else the full (small) batch.
    TB = 8 if B >= 8 else B

    # Sublane tile for the x/out dtype (f32: 8, bf16: 16, int8/fp8: 32).
    sub = max(8, 32 // itemsize)
    c_pad = _round_up(C, sub)         # x block pads C  -> c_pad sublanes in VMEM
    tb_pad = _round_up(TB, sub)       # out block pads TB -> tb_pad sublanes

    # Per-128-lane-column VMEM cost of the working set:
    #   2x-buffered x tile + 2x-buffered (2-head) out tile + f32 accumulator.
    per_lane = (2 * TB * c_pad * itemsize       # x, double-buffered, padded C
                + 2 * 2 * tb_pad * itemsize     # out, double-buffered, 2 heads
                + 2 * TB * 4)                   # in-kernel f32 temp
    vmem_cap = _vmem_capacity_bytes()
    vmem_limit = int(min(vmem_cap * 3 // 4, 96 * 1024 * 1024))
    ws_budget = vmem_limit // 2                 # headroom for compiler scratch
    thw_cap = max(128, (ws_budget // per_lane) // 128 * 128)

    if HW % 128 == 0:
        THW = min(thw_cap, HW)
    elif _round_up(HW, 128) <= thw_cap:
        THW = HW                                # full-extent block (always legal)
    else:
        THW = thw_cap                           # 128-multiple; partial last block

    grid_b = pl.cdiv(B, TB)
    grid_s = pl.cdiv(HW, THW)

    # Put a multi-step axis first so v7x's two TensorCores both get grid steps.
    # The tiny emb block depends only on the batch index, so it stays VMEM-
    # resident across the inner axis in either ordering.
    batch_leading = (grid_b > 1) or (grid_s == 1)
    if batch_leading:
        grid = (grid_b, grid_s)
        x_spec = pl.BlockSpec((TB, C, THW), lambda b, s: (b, 0, s))
        emb_spec = pl.BlockSpec((2, TB, C), lambda b, s: (0, b, 0))
        out_spec = pl.BlockSpec((2, TB, THW), lambda b, s: (0, b, s))
    else:
        grid = (grid_s, grid_b)
        x_spec = pl.BlockSpec((TB, C, THW), lambda s, b: (b, 0, s))
        emb_spec = pl.BlockSpec((2, TB, C), lambda s, b: (0, b, 0))
        out_spec = pl.BlockSpec((2, TB, THW), lambda s, b: (0, b, s))

    cost = pl.CostEstimate(
        flops=4 * B * C * HW,
        transcendentals=0,
        bytes_accessed=B * C * HW * itemsize + 2 * B * C * 4
        + 2 * B * HW * itemsize)

    out = pl.pallas_call(
        _proj_disc_kernel,
        out_shape=jax.ShapeDtypeStruct((2, B, HW), x.dtype),
        grid_spec=pltpu.PrefetchScalarGridSpec(
            num_scalar_prefetch=0,
            grid=grid,
            in_specs=[x_spec, emb_spec],
            out_specs=out_spec),
        compiler_params=pltpu.CompilerParams(
            # No reduction axis: every grid step writes a disjoint output slab.
            dimension_semantics=("parallel", "parallel"),
            vmem_limit_bytes=vmem_limit),
        cost_estimate=cost,
    )(x_flat, emb)

    # Output slab (2, B, HW) -> [font (B,1,H,W), char (B,1,H,W)] (layout plumbing)
    font_out = out[0].reshape(B, 1, H, W)
    char_out = out[1].reshape(B, 1, H, W)
    return [font_out, char_out]


def spectral_normalize(w, n_iter=10):
    """Divide weight matrix by its largest singular value, matching
    torch.nn.utils.spectral_norm inference behavior. Plain-JAX glue."""
    # TODO(synk): torch keeps a persistent randomly-initialized power-iteration
    # vector u (updated once per training step); a deterministic init with 10
    # iterations is used here for reproducibility.
    u = jnp.ones((w.shape[0],), jnp.float32) / jnp.sqrt(w.shape[0])
    for _ in range(n_iter):
        v = w.T @ u
        v = v / (jnp.linalg.norm(v) + 1e-12)
        u = w @ v
        u = u / (jnp.linalg.norm(u) + 1e-12)
    sigma = u @ (w @ v)
    return w / sigma


def reference_forward(x, font_emb_w, char_emb_w, font_indice, char_indice):
    fe = jnp.take(font_emb_w, font_indice, axis=0)
    ce = jnp.take(char_emb_w, char_indice, axis=0)
    fo = jnp.einsum('bchw,bc->bhw', x, fe)[:, None]
    co = jnp.einsum('bchw,bc->bhw', x, ce)[:, None]
    return [fo, co]


if __name__ == "__main__":
    key = jax.random.PRNGKey(0)
    B, C, H, W = 2, 4, 16, 16
    n_fonts, n_chars = 8, 10

    k1, k2, k3, k4, k5 = jax.random.split(key, 5)
    x = jax.random.normal(k1, (B, C, H, W), jnp.float32)
    font_w = spectral_normalize(jax.random.normal(k2, (n_fonts, C), jnp.float32))
    char_w = spectral_normalize(jax.random.normal(k3, (n_chars, C), jnp.float32))
    font_indice = jax.random.randint(k4, (B,), 0, n_fonts)
    char_indice = jax.random.randint(k5, (B,), 0, n_chars)

    outs = projection_discriminator_forward(x, font_w, char_w,
                                            font_indice, char_indice)
    outs = [jax.block_until_ready(o) for o in outs]

    refs = reference_forward(x, font_w, char_w, font_indice, char_indice)
    for o, r in zip(outs, refs):
        assert o.shape == r.shape, (o.shape, r.shape)
        assert jnp.allclose(o, r, atol=1e-4, rtol=1e-4)

    print("KERNEL_OK")
</pallas_src>

<mosaic_0001>
module attributes {stable_mosaic.version = 11 : i64} {
  func.func @_proj_disc_kernel(%arg0: i32, %arg1: i32, %arg2: memref<2x4x256xf32, #tpu.memory_space<vmem>>, %arg3: memref<2x2x4xf32, #tpu.memory_space<vmem>>, %arg4: memref<2x2x256xf32, #tpu.memory_space<vmem>>) attributes {dimension_semantics = [#tpu.dimension_semantics<parallel>, #tpu.dimension_semantics<parallel>], iteration_bounds = array<i64: 1, 1>, scalar_prefetch = 0 : i64, scratch_operands = 0 : i64, tpu.core_type = #tpu.core_type<tc>, window_params = [{transform_indices = @transform_0, window_bounds = array<i64: 2, 4, 256>}, {transform_indices = @transform_1, window_bounds = array<i64: 2, 2, 4>}, {transform_indices = @transform_2, window_bounds = array<i64: 2, 2, 256>}]} {
    %c0 = arith.constant 0 : index
    %c0_0 = arith.constant 0 : index
    %c0_1 = arith.constant 0 : index
    %0 = vector.load %arg3[%c0, %c0_0, %c0_1] : memref<2x2x4xf32, #tpu.memory_space<vmem>>, vector<2x2x4xf32>
    %1 = vector.extract_strided_slice %0 {offsets = [0, 0, 0], sizes = [2, 2, 1], strides = [1, 1, 1]} : vector<2x2x4xf32> to vector<2x2x1xf32>
    %c0_2 = arith.constant 0 : index
    %c0_3 = arith.constant 0 : index
    %c0_4 = arith.constant 0 : index
    %2 = vector.load %arg2[%c0_2, %c0_3, %c0_4] : memref<2x4x256xf32, #tpu.memory_space<vmem>>, vector<2x1x256xf32>
    %3 = vector.shape_cast %2 : vector<2x1x256xf32> to vector<2x256xf32>
    %4 = vector.shape_cast %3 : vector<2x256xf32> to vector<1x2x256xf32>
    %5 = vector.broadcast %1 : vector<2x2x1xf32> to vector<2x2x256xf32>
    %6 = vector.broadcast %4 : vector<1x2x256xf32> to vector<2x2x256xf32>
    %7 = arith.mulf %5, %6 : vector<2x2x256xf32>
    %8 = vector.extract_strided_slice %0 {offsets = [0, 0, 1], sizes = [2, 2, 1], strides = [1, 1, 1]} : vector<2x2x4xf32> to vector<2x2x1xf32>
    %c0_5 = arith.constant 0 : index
    %c1 = arith.constant 1 : index
    %c0_6 = arith.constant 0 : index
    %9 = vector.load %arg2[%c0_5, %c1, %c0_6] : memref<2x4x256xf32, #tpu.memory_space<vmem>>, vector<2x1x256xf32>
    %10 = vector.shape_cast %9 : vector<2x1x256xf32> to vector<2x256xf32>
    %11 = vector.shape_cast %10 : vector<2x256xf32> to vector<1x2x256xf32>
    %12 = vector.broadcast %8 : vector<2x2x1xf32> to vector<2x2x256xf32>
    %13 = vector.broadcast %11 : vector<1x2x256xf32> to vector<2x2x256xf32>
    %14 = arith.mulf %12, %13 : vector<2x2x256xf32>
    %15 = arith.addf %7, %14 : vector<2x2x256xf32>
    %16 = vector.extract_strided_slice %0 {offsets = [0, 0, 2], sizes = [2, 2, 1], strides = [1, 1, 1]} : vector<2x2x4xf32> to vector<2x2x1xf32>
    %c0_7 = arith.constant 0 : index
    %c2 = arith.constant 2 : index
    %c0_8 = arith.constant 0 : index
    %17 = vector.load %arg2[%c0_7, %c2, %c0_8] : memref<2x4x256xf32, #tpu.memory_space<vmem>>, vector<2x1x256xf32>
    %18 = vector.shape_cast %17 : vector<2x1x256xf32> to vector<2x256xf32>
    %19 = vector.shape_cast %18 : vector<2x256xf32> to vector<1x2x256xf32>
    %20 = vector.broadcast %16 : vector<2x2x1xf32> to vector<2x2x256xf32>
    %21 = vector.broadcast %19 : vector<1x2x256xf32> to vector<2x2x256xf32>
    %22 = arith.mulf %20, %21 : vector<2x2x256xf32>
    %23 = arith.addf %15, %22 : vector<2x2x256xf32>
    %24 = vector.extract_strided_slice %0 {offsets = [0, 0, 3], sizes = [2, 2, 1], strides = [1, 1, 1]} : vector<2x2x4xf32> to vector<2x2x1xf32>
    %c0_9 = arith.constant 0 : index
    %c3 = arith.constant 3 : index
    %c0_10 = arith.constant 0 : index
    %25 = vector.load %arg2[%c0_9, %c3, %c0_10] : memref<2x4x256xf32, #tpu.memory_space<vmem>>, vector<2x1x256xf32>
    %26 = vector.shape_cast %25 : vector<2x1x256xf32> to vector<2x256xf32>
    %27 = vector.shape_cast %26 : vector<2x256xf32> to vector<1x2x256xf32>
    %28 = vector.broadcast %24 : vector<2x2x1xf32> to vector<2x2x256xf32>
    %29 = vector.broadcast %27 : vector<1x2x256xf32> to vector<2x2x256xf32>
    %30 = arith.mulf %28, %29 : vector<2x2x256xf32>
    %31 = arith.addf %23, %30 : vector<2x2x256xf32>
    %c0_11 = arith.constant 0 : index
    %c0_12 = arith.constant 0 : index
    %c0_13 = arith.constant 0 : index
    %32 = vector.load %arg4[%c0_11, %c0_12, %c0_13] : memref<2x2x256xf32, #tpu.memory_space<vmem>>, vector<2x2x256xf32>
    tpu.vector_store %arg4[%c0_11, %c0_12, %c0_13], %31 {strides = array<i32>} : memref<2x2x256xf32, #tpu.memory_space<vmem>>, vector<2x2x256xf32>,
    return
  }
  func.func @transform_0(%arg0: i32, %arg1: i32) -> (i32, i32, i32) {
    %c0_i32 = arith.constant 0 : i32
    %c0_i32_0 = arith.constant 0 : i32
    return %arg0, %c0_i32, %arg1 : i32, i32, i32
  }
  func.func @transform_1(%arg0: i32, %arg1: i32) -> (i32, i32, i32) {
    %c0_i32 = arith.constant 0 : i32
    %c0_i32_0 = arith.constant 0 : i32
    %c0_i32_1 = arith.constant 0 : i32
    return %c0_i32, %arg0, %c0_i32_0 : i32, i32, i32
  }
  func.func @transform_2(%arg0: i32, %arg1: i32) -> (i32, i32, i32) {
    %c0_i32 = arith.constant 0 : i32
    %c0_i32_0 = arith.constant 0 : i32
    return %c0_i32, %arg0, %arg1 : i32, i32, i32
  }
}

</mosaic_0001>

<bundles_post_ra>
// kernel: tpu_custom_call.1
= control target key start
LH: loop header
LB: loop body
LE: loop exit
PB: predicated region body
PF: predicated region fallthrough
CT: control target
= control target key end

     0   :  { %7 = vsyncpa [#allocation3], 0  ;;  %s428_s0 = inlined_call_operand.hbm [shape: f32[2,4,256], index: 0, kind: input, shape index: {}]   ;;  %s429_s1 = inlined_call_operand.hbm [shape: f32[2,2,4], index: 1, kind: input, shape index: {}]   ;;  %s430_s2 = inlined_call_operand.hbm [shape: f32[2,2,256], index: 2, kind: output, shape index: {}]  }
   0x1   :  { %8 = vsyncpa [#allocation6], 0 }
   0x2   :  { %9 = vsyncpa [#allocation4], 0  ;;  %s363_s9 = smov [#allocation2]   ;;  %s291_s13 = scalar_lea.hbm %s428_s0, 256 }
   0x3   :  { %s15_s10 = sshll.u32 %s363_s9, 4  ;;  %p292_p0 = scmp.ne.s32.totalorder %s428_s0, %s291_s13  ;;  %s16_s10 = int_to_ptr.vmem [resolvable:$true] %s15_s10 }
   0x4   :  { %p295_p1 = scmp.lt.u32.totalorder %s291_s13, %s428_s0 }
   0x6   :  { %p297_p2 = pnand %p295_p1, %p292_p0 }
   0x8   :  { %300 = shalt.err (!%p297_p2)
}
   0x9   :  { %s301_s18 = scalar_lea.vmem %s16_s10, 256  ;;  %p306_p4 = scmp.lt.s32.totalorder %s16_s10, %s16_s10 }
   0xa   :  { %p302_p3 = scmp.ne.s32.totalorder %s16_s10, %s301_s18  ;;  %p307_p5 = scmp.lt.s32.totalorder %s301_s18, %s301_s18 }
   0xc   :  { %p308_p6 = por %p307_p5, %p306_p4 }
   0xe   :  { %p309_p7 = pnand %p308_p6, %p302_p3 }
  0x10   :  { %312 = shalt.err (!%p309_p7)
}
  0x11   :  { %s364_s19 = smov 128   ;;  %s365_s20 = smov 8  }
  0x12   :  { %21 = dma.hbm_to_vmem [thread:$0]  %s428_s0, 256, %s16_s10, [#allocation3], %s364_s19, %s364_s19, %s365_s20  }
  0x13   :  { %s366_s23 = smov [#allocation5]   ;;  %s313_s27 = scalar_lea.hbm %s429_s1, 64 }
  0x14   :  { %s27_s24 = sshll.u32 %s366_s23, 4  ;;  %p314_p8 = scmp.ne.s32.totalorder %s429_s1, %s313_s27  ;;  %s28_s24 = int_to_ptr.vmem [resolvable:$true] %s27_s24 }
  0x15   :  { %p317_p9 = scmp.lt.u32.totalorder %s313_s27, %s429_s1 }
  0x17   :  { %p319_p10 = pnand %p317_p9, %p314_p8 }
  0x19   :  { %322 = shalt.err (!%p319_p10)
}
  0x1a   :  { %s323_s4 = scalar_lea.vmem %s28_s24, 64  ;;  %p328_p12 = scmp.lt.s32.totalorder %s28_s24, %s28_s24 }
  0x1b   :  { %p324_p11 = scmp.ne.s32.totalorder %s28_s24, %s323_s4  ;;  %p329_p13 = scmp.lt.s32.totalorder %s323_s4, %s323_s4 }
  0x1d   :  { %p330_p0 = por %p329_p13, %p328_p12 }
  0x1f   :  { %p331_p1 = pnand %p330_p0, %p324_p11 }
  0x21   :  { %334 = shalt.err (!%p331_p1)
}
  0x22   :  { %s367_s0 = smov 32   ;;  %s368_s5 = smov 2  }
  0x23   :  { %33 = dma.hbm_to_vmem [thread:$0]  %s429_s1, 64, %s28_s24, [#allocation6], %s367_s0, %s367_s0, %s368_s5  }
  0x24   :  { %357 = dma.done.wait [#allocation3], 256  }
  0x25   :  { %358 = vsyncadd [#allocation3], 4294967040 }
  0x26   :  { %359 = dma.done.wait [#allocation6], 64  }
  0x27   :  { %360 = vsyncadd [#allocation6], 4294967232  ;;  %v369_v0 = vmov 1   ;;  %v370_v1 = vmov 0   ;;  %v40_v2 = vld [vmem:[#allocation5] sm:$0x3]  ;;  %v61_v6 = vlaneseq }
  0x28   :  { %286 = vset.pattern.permute.xlu1 %v369_v0  ;;  %285 = vset.pattern.permute.xlu0 %v370_v1  ;;  %v41_v3 = vld [vmem:[#allocation5 + $0x2] sm:$0x3]  ;;  %v371_v4 = vmov 2   ;;  %v372_v5 = vmov 3   ;;  %v373_v7 = vmov 1966171168  }
  0x29   :  { %91 = vperm.xlu1 %286, %v40_v2   ;;  %47 = vperm.xlu0 %285, %v40_v2   ;;  %v59_v8 = vunpack.c.l.s4 %v373_v7  ;;  %v62_v9 = vshrl.u32 %v61_v6, 7  ;;  %v87_v11 = vld [vmem:[#allocation2 + $0x1] ss:$4 sm:$0x3]  ;;  %s374_s1 = smov [#allocation7]  }
  0x2a   :  { %v89_v12 = vld [vmem:[#allocation2 + $0x9] ss:$4 sm:$0x3]  ;;  %v42_v13 = vld [vmem:[#allocation2] ss:$4 sm:$0x3] }
  0x2b   :  { %v60_v10 = vunpack.c.0.s8 %v59_v8  ;;  %v44_v14 = vld [vmem:[#allocation2 + $0x8] ss:$4 sm:$0x3]  ;;  %v100_v16 = vcombine.low %v87_v11, %v89_v12  ;;  %v134_v18 = vld [vmem:[#allocation2 + $0x2] ss:$4 sm:$0x3] }
  0x2c   :  { %v57_v17 = vcombine.low %v42_v13, %v44_v14  ;;  %v136_v19 = vld [vmem:[#allocation2 + $0xa] ss:$4 sm:$0x3]  ;;  %v181_v23 = vld [vmem:[#allocation2 + $0x3] ss:$4 sm:$0x3] }
  0x2d   :  { %95 = vperm.xlu1 %286, %v41_v3   ;;  %52 = vperm.xlu0 %285, %v41_v3   ;;  %v63_v15 = vsub.s32 %v60_v10, %v62_v9  ;;  %v147_v20 = vcombine.low %v134_v18, %v136_v19  ;;  %v183_v24 = vld [vmem:[#allocation2 + $0xb] ss:$4 sm:$0x3]  ;;  %s256_s8 = sshll.u32 %s374_s1, 4  ;;  %s257_s8 = int_to_ptr.vmem [resolvable:$true] %s256_s8 }
  0x2e   :  { %v194_v26 = vcombine.low %v181_v23, %v183_v24  ;;  %s335_s9 = scalar_lea.vmem %s257_s8, 128  ;;  %p340_p3 = scmp.lt.s32.totalorder %s257_s8, %s257_s8 }
  0x2f   :  { %v107_v21 = vrot.slane %v100_v16, %v63_v15  ;;  %v64_v22 = vrot.slane %v57_v17, %v63_v15  ;;  %v154_v25 = vrot.slane %v147_v20, %v63_v15  ;;  %p336_p2 = scmp.ne.s32.totalorder %s257_s8, %s335_s9  ;;  %p341_p4 = scmp.lt.s32.totalorder %s335_s9, %s335_s9 }
  0x30   :  { %v201_v32 = vrot.slane %v194_v26, %v63_v15 }
  0x31   :  { %288 = vset.pattern.permute.xlu1 %v371_v4  ;;  %287 = vset.pattern.permute.xlu0 %v371_v4  ;;  %v108_v27 = vcombine.high %v107_v21, %v107_v21  ;;  %v65_v28 = vcombine.high %v64_v22, %v64_v22  ;;  %v155_v31 = vcombine.high %v154_v25, %v154_v25  ;;  %p342_p5 = por %p341_p4, %p340_p3 }
  0x32   :  { %142 = vperm.xlu1 %288, %v41_v3   ;;  %138 = vperm.xlu0 %287, %v40_v2   ;;  %v115_v33 = vrot.slane %v107_v21, %v63_v15  ;;  %v72_v35 = vrot.slane %v64_v22, %v63_v15  ;;  %v162_v39 = vrot.slane %v154_v25, %v63_v15 }
  0x33   :  { %v122_v34 = vrot.slane %v108_v27, %v63_v15  ;;  %v79_v36 = vrot.slane %v65_v28, %v63_v15  ;;  %v169_v40 = vrot.slane %v155_v31, %v63_v15  ;;  %v202_v41 = vcombine.high %v201_v32, %v201_v32  ;;  %p343_p6 = pnand %p342_p5, %p336_p2 }
  0x34   :  { %v209_v56 = vrot.slane %v201_v32, %v63_v15 }
  0x35   :  { %v216_v57 = vrot.slane %v202_v41, %v63_v15 }
  0x36   :  { %289 = vset.pattern.permute.xlu1 %v372_v5  ;;  %290 = vset.pattern.permute.xlu0 %v372_v5 }
  0x37   :  { %185 = vperm.xlu1 %289, %v40_v2   ;;  %189 = vperm.xlu0 %290, %v41_v3  }
  0xa8   :  { %v92_v29 = vpop.permute.xlu1 %91  ;;  %v48_v30 = vpop.permute.xlu0 %47 }
  0xa9   :  { %v125_v42 = vmul.f32 %v115_v33, %v92_v29  ;;  %v126_v43 = vmul.f32 %v122_v34, %v92_v29  ;;  %v82_v44 = vmul.f32 %v72_v35, %v48_v30  ;;  %v83_v45 = vmul.f32 %v79_v36, %v48_v30 }
  0xab   :  { %v129_v58 = vadd.f32 %v125_v42, %v82_v44  ;;  %v130_v59 = vadd.f32 %v126_v43, %v83_v45 }
  0xac   :  { %v96_v37 = vpop.permute.xlu1 %95  ;;  %v53_v38 = vpop.permute.xlu0 %52 }
  0xad   :  { %v127_v46 = vmul.f32 %v115_v33, %v96_v37  ;;  %v128_v47 = vmul.f32 %v122_v34, %v96_v37  ;;  %v84_v48 = vmul.f32 %v72_v35, %v53_v38  ;;  %v85_v49 = vmul.f32 %v79_v36, %v53_v38 }
  0xaf   :  { %v131_v60 = vadd.f32 %v127_v46, %v84_v48  ;;  %v132_v61 = vadd.f32 %v128_v47, %v85_v49 }
  0xb1   :  { %v143_v50 = vpop.permute.xlu1 %142  ;;  %v139_v51 = vpop.permute.xlu0 %138 }
  0xb2   :  { %v174_v52 = vmul.f32 %v162_v39, %v143_v50  ;;  %v175_v53 = vmul.f32 %v169_v40, %v143_v50  ;;  %v172_v54 = vmul.f32 %v162_v39, %v139_v51  ;;  %v173_v55 = vmul.f32 %v169_v40, %v139_v51 }
  0xb4   :  { %v178_v62 = vadd.f32 %v174_v52, %v131_v60  ;;  %v179_v63 = vadd.f32 %v175_v53, %v132_v61  ;;  %v176_v0 = vadd.f32 %v172_v54, %v129_v58  ;;  %v177_v1 = vadd.f32 %v173_v55, %v130_v59 }
  0xb6   :  { %v186_v2 = vpop.permute.xlu1 %185  ;;  %v190_v3 = vpop.permute.xlu0 %189 }
  0xb7   :  { %v219_v4 = vmul.f32 %v209_v56, %v186_v2  ;;  %v220_v5 = vmul.f32 %v216_v57, %v186_v2  ;;  %v221_v6 = vmul.f32 %v209_v56, %v190_v3  ;;  %v222_v7 = vmul.f32 %v216_v57, %v190_v3 }
  0xb9   :  { %v223_v8 = vadd.f32 %v219_v4, %v176_v0  ;;  %v224_v9 = vadd.f32 %v220_v5, %v177_v1  ;;  %v225_v10 = vadd.f32 %v221_v6, %v178_v62  ;;  %v226_v11 = vadd.f32 %v222_v7, %v179_v63 }
  0xbb   :  { %v231_v12 = vcombine.low %v223_v8, %v224_v9  ;;  %v239_v13 = vcombine.low %v225_v10, %v226_v11 }
  0xbd   :  { %269 = vst.sshfl [vmem:[#allocation7] sm:$0x33 pattern:$0x76325410] %v231_v12 }
  0xbe   :  { %270 = vst.sshfl [vmem:[#allocation7 + $0x4] sm:$0x33 pattern:$0x76325410] %v239_v13 }
  0xbf   :  { %346 = shalt.err (!%p343_p6)
}
  0xc0   :  { %s347_s12 = scalar_lea.hbm %s430_s2, 128 }
  0xc1   :  { %p348_p7 = scmp.ne.s32.totalorder %s430_s2, %s347_s12  ;;  %p351_p8 = scmp.lt.u32.totalorder %s347_s12, %s430_s2 }
  0xc3   :  { %p353_p9 = pnand %p351_p8, %p348_p7 }
  0xc5   :  { %356 = shalt.err (!%p353_p9)
}
  0xc6   :  { %s375_s17 = smov 64   ;;  %s376_s18 = smov 4  }
  0xc7   :  { %262 = dma.vmem_to_hbm [thread:$0]  %s257_s8, 128, %s430_s2, [#allocation4], %s375_s17, %s375_s17, %s376_s18  }
  0xc8   :  { %361 = dma.done.wait [#allocation4], 128  }
  0xc9   :  { %362 = vsyncadd [#allocation4], 4294967168 }
  0xca   :  { %266 = vsyncpa [#allocation3], 1 }
  0xcb   :  { %267 = vsyncpa [#allocation6], 1 }
  0xcc   :  { %268 = vsyncpa [#allocation4], 1 }

</bundles_post_ra>
